<compile_context>
chip_gen: v5e
topology: v5e:2x2
jax: 0.10.0
libtpu: 0.0.40
codegen_flags: <defaults>
</compile_context>

<pallas_src>
import math

import jax
import jax.numpy as jnp
from jax.experimental import pallas as pl
from jax.experimental.pallas import tpu as pltpu


def _nll_rows_kernel(z_ref, ld_ref, out_ref):
    """Per-row NLL, produced lane-dense.

    z_ref:   [tile_n, D]   (D on lanes)
    ld_ref:  [1, tile_n]   (lane-dense log-determinants)
    out_ref: [1, tile_n]   (lane-dense per-row NLL, f32)
    """
    z = z_ref[...].astype(jnp.float32)        # [T, D]
    ld = ld_ref[...].astype(jnp.float32)      # [1, T]
    d = z.shape[1]

    zsq = z * z                               # VPU
    ones = jnp.ones((1, d), dtype=jnp.float32)
    # Row-wise sum of squares as an MXU contraction over D (rhs contracts on
    # its last dim, like the flash-attention 'bqd,bkd->bqk' pattern). The
    # result lands directly in the lane-dense [1, T] layout.
    ssq = jax.lax.dot_general(
        ones, zsq,
        dimension_numbers=(((1,), (1,)), ((), ())),
        preferred_element_type=jnp.float32,
    )                                          # [1, T]

    half_d_log_2pi = jnp.float32(0.5 * d * math.log(2.0 * math.pi))
    out_ref[...] = half_d_log_2pi + 0.5 * ssq - ld


def _choose_tile_n(n, d, itemsize, vmem_budget_bytes):
    """Largest row tile whose double-buffered z slab fits the VMEM budget."""
    rows = max(1, vmem_budget_bytes // (2 * d * itemsize))  # 2 pipeline buffers
    if n <= rows:
        return int(n)                      # single block == full array dims
    return int(max(128, (rows // 128) * 128))  # lane-dense multiple of 128


def transformed_normal_loss(z, log_det, reduction="mean", tile_n=None,
                            vmem_budget_bytes=16 << 20):
    """Pallas implementation of TransformedNormalLoss.forward.

    z:       [N, D] float array (f32 or bf16; kept as-is in HBM)
    log_det: [N]    float array
    returns: scalar (mean/sum) or [N] (none), float32
    """
    if reduction not in ("mean", "sum", "none"):
        raise ValueError(f"Invalid reduction {reduction}")
    N, D = z.shape
    assert log_det.shape == (N,), "log_det must have shape [N]"

    itemsize = jnp.dtype(z.dtype).itemsize
    if tile_n is None:
        tile_n = _choose_tile_n(N, D, itemsize, vmem_budget_bytes)
    elif tile_n != N and tile_n % 128 != 0:
        raise ValueError("tile_n must equal N or be a multiple of 128")

    grid = (pl.cdiv(N, tile_n),)
    ld2 = log_det.reshape(1, N)            # lane-dense log_det

    # Generous VMEM ceiling: covers the double-buffered z tile plus the small
    # lane-dense ld/out buffers, stays <= 64 MiB (v7x physical VMEM).
    z_tile_bytes = tile_n * D * itemsize
    vmem_limit = int(min(64 << 20, max(32 << 20, 3 * z_tile_bytes + (8 << 20))))

    nll2 = pl.pallas_call(
        _nll_rows_kernel,
        out_shape=jax.ShapeDtypeStruct((1, N), jnp.float32),
        grid_spec=pltpu.PrefetchScalarGridSpec(
            num_scalar_prefetch=0,
            grid=grid,
            in_specs=[
                pl.BlockSpec((tile_n, D), lambda i: (i, 0)),   # z rows
                pl.BlockSpec((1, tile_n), lambda i: (0, i)),   # log_det, lane-dense
            ],
            out_specs=pl.BlockSpec((1, tile_n), lambda i: (0, i)),
        ),
        compiler_params=pltpu.CompilerParams(
            dimension_semantics=("parallel",),
            vmem_limit_bytes=vmem_limit,
        ),
    )(z, ld2)

    nll = nll2[0]                          # [N] f32
    if reduction == "mean":
        return jnp.mean(nll)
    if reduction == "sum":
        return jnp.sum(nll)
    return nll


def _reference(z, log_det, reduction="mean"):
    d = z.shape[1]
    zf = z.astype(jnp.float32)
    log_prob = (-0.5 * d * math.log(2.0 * math.pi)
                - 0.5 * jnp.sum(zf * zf, axis=1))
    nll = -log_prob - log_det.astype(jnp.float32)
    if reduction == "mean":
        return nll.mean()
    if reduction == "sum":
        return nll.sum()
    return nll


if __name__ == "__main__":
    key = jax.random.PRNGKey(0)
    k1, k2, k3, k4 = jax.random.split(key, 4)

    ok = True

    # Small case: single block (block shape == full array dims).
    N, D = 16, 32
    z = jax.random.normal(k1, (N, D), dtype=jnp.float32)
    log_det = jax.random.normal(k2, (N,), dtype=jnp.float32)
    for red in ("mean", "sum", "none"):
        out = jax.block_until_ready(transformed_normal_loss(z, log_det, reduction=red))
        ref = _reference(z, log_det, reduction=red)
        ok = ok and bool(jnp.allclose(out, ref, rtol=1e-5, atol=1e-5))

    # Multi-tile ragged case: exercises 128-row lane-dense tiles + OOB clipping.
    N2, D2 = 300, 64
    z2 = jax.random.normal(k3, (N2, D2), dtype=jnp.float32)
    logdet2 = jax.random.normal(k4, (N2,), dtype=jnp.float32)
    for red in ("mean", "sum", "none"):
        out = jax.block_until_ready(
            transformed_normal_loss(z2, logdet2, reduction=red, tile_n=128))
        ref = _reference(z2, logdet2, reduction=red)
        ok = ok and bool(jnp.allclose(out, ref, rtol=1e-5, atol=1e-5))

    if ok:
        print("KERNEL_OK")
</pallas_src>

<mosaic_0001>
module attributes {stable_mosaic.version = 11 : i64} {
  func.func @_nll_rows_kernel(%arg0: i32, %arg1: memref<16x32xf32, #tpu.memory_space<vmem>>, %arg2: memref<1x16xf32, #tpu.memory_space<vmem>>, %arg3: memref<1x16xf32, #tpu.memory_space<vmem>>) attributes {dimension_semantics = [#tpu.dimension_semantics<parallel>], iteration_bounds = array<i64: 1>, scalar_prefetch = 0 : i64, scratch_operands = 0 : i64, tpu.core_type = #tpu.core_type<tc>, window_params = [{transform_indices = @transform_0, window_bounds = array<i64: 16, 32>}, {transform_indices = @transform_1, window_bounds = array<i64: 1, 16>}, {transform_indices = @transform_2, window_bounds = array<i64: 1, 16>}]} {
    %c0 = arith.constant 0 : index
    %c0_0 = arith.constant 0 : index
    %0 = vector.load %arg1[%c0, %c0_0] : memref<16x32xf32, #tpu.memory_space<vmem>>, vector<16x32xf32>
    %c0_1 = arith.constant 0 : index
    %c0_2 = arith.constant 0 : index
    %1 = vector.load %arg2[%c0_1, %c0_2] : memref<1x16xf32, #tpu.memory_space<vmem>>, vector<1x16xf32>
    %2 = arith.mulf %0, %0 : vector<16x32xf32>
    %cst = arith.constant 1.000000e+00 : f32
    %3 = vector.broadcast %cst : f32 to vector<1x32xf32>
    %cst_3 = arith.constant dense<0.000000e+00> : vector<1x16xf32>
    %4 = tpu.matmul %3, %2, %cst_3 {dimension_numbers = #tpu.dot_dimension_numbers<[1], [1], [0], [0], [0, 0, 1, 0], [], []>} : vector<1x32xf32>, vector<16x32xf32>, vector<1x16xf32> -> vector<1x16xf32>
    %cst_4 = arith.constant 5.000000e-01 : f32
    %5 = vector.broadcast %cst_4 : f32 to vector<1x16xf32>
    %6 = arith.mulf %5, %4 : vector<1x16xf32>
    %cst_5 = arith.constant 29.4060326 : f32
    %7 = vector.broadcast %cst_5 : f32 to vector<1x16xf32>
    %8 = arith.addf %7, %6 : vector<1x16xf32>
    %9 = arith.subf %8, %1 : vector<1x16xf32>
    %c0_6 = arith.constant 0 : index
    %c0_7 = arith.constant 0 : index
    %10 = vector.load %arg3[%c0_6, %c0_7] : memref<1x16xf32, #tpu.memory_space<vmem>>, vector<1x16xf32>
    tpu.vector_store %arg3[%c0_6, %c0_7], %9 {strides = array<i32>} : memref<1x16xf32, #tpu.memory_space<vmem>>, vector<1x16xf32>,
    return
  }
  func.func @transform_0(%arg0: i32) -> (i32, i32) {
    %c0_i32 = arith.constant 0 : i32
    %c0_i32_0 = arith.constant 0 : i32
    return %arg0, %c0_i32 : i32, i32
  }
  func.func @transform_1(%arg0: i32) -> (i32, i32) {
    %c0_i32 = arith.constant 0 : i32
    %c0_i32_0 = arith.constant 0 : i32
    return %c0_i32, %arg0 : i32, i32
  }
  func.func @transform_2(%arg0: i32) -> (i32, i32) {
    %c0_i32 = arith.constant 0 : i32
    %c0_i32_0 = arith.constant 0 : i32
    return %c0_i32, %arg0 : i32, i32
  }
}

</mosaic_0001>

<bundles_post_ra>
// kernel: tpu_custom_call.1
= control target key start
LH: loop header
LB: loop body
LE: loop exit
PB: predicated region body
PF: predicated region fallthrough
CT: control target
= control target key end

     0   :  { %7 = vsyncpa [#allocation3], 0  ;;  %s217_s0 = inlined_call_operand.hbm [shape: f32[16,32], index: 0, kind: input, shape index: {}]   ;;  %s218_s1 = inlined_call_operand.hbm [shape: f32[1,16], index: 1, kind: input, shape index: {}]   ;;  %s219_s2 = inlined_call_operand.hbm [shape: f32[1,16], index: 2, kind: output, shape index: {}]  }
   0x1   :  { %8 = vsyncpa [#allocation6], 0 }
   0x2   :  { %9 = vsyncpa [#allocation4], 0  ;;  %s14_s11 = sshll.u32 %s217_s0, 4  ;;  %s187_s12 = smov [#allocation2]   ;;  %s15_s11 = int_to_ptr.hbm [resolvable:$true] %s14_s11 }
   0x3   :  { %s16_s13 = sshll.u32 %s187_s12, 4  ;;  %s28_s16 = sshll.u32 %s218_s1, 4  ;;  %s17_s13 = int_to_ptr.vmem [resolvable:$true] %s16_s13  ;;  %s29_s16 = int_to_ptr.hbm [resolvable:$true] %s28_s16 }
   0x4   :  { %s188_s17 = smov 128   ;;  %s189_s18 = smov 8  }
   0x5   :  { %22 = dma.hbm_to_vmem [thread:$0]  %s15_s11, 256, %s17_s13, [#allocation3], %s188_s17, %s188_s17, %s189_s18  }
   0x6   :  { %s190_s19 = smov [#allocation5]  }
   0x7   :  { %s30_s20 = sshll.u32 %s190_s19, 4  ;;  %s31_s20 = int_to_ptr.vmem [resolvable:$true] %s30_s20 }
   0x8   :  { %33 = dma.hbm_to_vmem [thread:$0]  %s29_s16, 16, %s31_s20, [#allocation6]  }
   0x9   :  { %181 = dma.done.wait [#allocation3], 256  }
   0xa   :  { %182 = vsyncadd [#allocation3], 4294967040 }
   0xb   :  { %183 = dma.done.wait [#allocation6], 16  }
   0xc   :  { %184 = vsyncadd [#allocation6], 4294967280  ;;  %v43_v0 = vld [vmem:[#allocation2 + $0x8] sm:$0xff]  ;;  %vm47_vm0 = vcmask 261120   ;;  %v42_v1 = vld [vmem:[#allocation2] sm:$0xff]  ;;  %v191_v4 = vmov 1.0  }
   0xd   :  { %v46_v2 = vmul.f32 %v43_v0, %v43_v0  ;;  %v45_v3 = vmul.f32 %v42_v1, %v42_v1  ;;  %v44_v7 = vld [vmem:[#allocation5] sm:$0x1]  ;;  %s192_s0 = smov [#allocation7]   ;;  %s89_s23 = sshll.u32 %s219_s2, 4  ;;  %vm80_vm1 = vcmask 122880   ;;  %s90_s23 = int_to_ptr.hbm [resolvable:$true] %s89_s23 }
   0xe   :  { %s87_s1 = sshll.u32 %s192_s0, 4  ;;  %s88_s1 = int_to_ptr.vmem [resolvable:$true] %s87_s1 }
   0xf   :  { %100 = vmatpush.xpose.msk.msra.mxu0 %vm47_vm0, %v46_v2 }
  0x13   :  { %101 = vmatpush.xpose.msk.msra.mxu0 %vm47_vm0, %v45_v3 }
  0x16   :  { %102 = vmatmul.msk.f32.vlgmr.msra.gmra.mxu0 %vm47_vm0, %v191_v4 }
  0x93   :  { %v74_v5 = vpop.f32.mrf.mxu0 }
  0x94   :  { %v77_v6 = vmul.f32 0.5, %v74_v5 }
  0x96   :  { %v78_v8 = vadd.f32 29.406033, %v77_v6 }
  0x98   :  { %v79_v9 = vsub.f32 %v78_v8, %v44_v7 }
  0x9a   :  { %81 = vst.msk [vmem:[#allocation7] sm:$0x1] %vm80_vm1, %v79_v9 }
  0x9b   :  { %92 = dma.vmem_to_hbm [thread:$0]  %s88_s1, 16, %s90_s23, [#allocation4]  }
  0x9c   :  { %185 = dma.done.wait [#allocation4], 16  }
  0x9d   :  { %186 = vsyncadd [#allocation4], 4294967280 }
  0x9e   :  { %97 = vsyncpa [#allocation3], 1 }
  0x9f   :  { %98 = vsyncpa [#allocation6], 1 }
  0xa0   :  { %99 = vsyncpa [#allocation4], 1 }

</bundles_post_ra>
